<compile_context>
chip_gen: v7x
topology: tpu7x:2x2x1
jax: 0.10.0
libtpu: 0.0.40
codegen_flags: <defaults>
</compile_context>

<pallas_src>
import functools

import jax
import jax.numpy as jnp
from jax import lax
from jax.experimental import pallas as pl
from jax.experimental.pallas import tpu as pltpu


def _vmem_limit_bytes():
    # v5e/v6e: 128 MiB physical -> 64 MiB limit; v7x: 64 MiB -> 32 MiB limit.
    try:
        cap = int(pltpu.get_tpu_info().vmem_capacity_bytes)
    except Exception:
        cap = 128 * 1024 * 1024
    return max(32 * 1024 * 1024, cap // 2)


VMEM_LIMIT = _vmem_limit_bytes()


# ----------------------------------------------------------------------------
# Padding / tiling helpers
# ----------------------------------------------------------------------------
def _round_up(x, m):
    return ((x + m - 1) // m) * m


def _fit(dim, tile, align):
    """Pad `dim` to `align` only (tight padding), then pick the largest block
    <= tile that divides the padded dim.  Falls back to padding up to a
    multiple of `tile` only when no reasonably-sized divisor exists."""
    p = _round_up(dim, align)
    if p <= tile:
        return p, p
    units = p // align
    for t in range(tile // align, 0, -1):
        if units % t == 0:
            blk = t * align
            if blk * 4 >= tile:
                return p, blk
            break
    return _round_up(dim, tile), tile


def _split_m_for_cores(Mp, tm):
    """Ensure >= 2 M tiles when M is the only parallel grid axis (v7x has two
    TensorCores; one extra grid step is negligible on v5e/v6e)."""
    if Mp // tm >= 2 or Mp < 32:
        return tm
    units = Mp // 16
    for t in range(units // 2, 0, -1):
        if units % t == 0:
            return t * 16
    return tm


def _pad2(a, rows, cols):
    if a.shape == (rows, cols):
        return a
    return jnp.pad(a, ((0, rows - a.shape[0]), (0, cols - a.shape[1])))


def _bf16(a):
    return a if a.dtype == jnp.bfloat16 else a.astype(jnp.bfloat16)


# ----------------------------------------------------------------------------
# Generic tiled matmul kernel:  Y = X @ W (+ b) (+ ReLU), bf16 in, f32 acc
# ----------------------------------------------------------------------------
def _mm_bias_kernel(x_ref, w_ref, b_ref, o_ref, acc_ref, *, relu):
    @pl.when(pl.program_id(2) == 0)
    def _():
        acc_ref[...] = jnp.zeros_like(acc_ref)

    acc_ref[...] += jnp.dot(x_ref[...], w_ref[...],
                            preferred_element_type=jnp.float32)

    @pl.when(pl.program_id(2) == pl.num_programs(2) - 1)
    def _():
        y = acc_ref[...] + b_ref[...]
        if relu:
            y = jnp.maximum(y, 0.0)
        o_ref[...] = y.astype(o_ref.dtype)


def _mm_kernel(x_ref, w_ref, o_ref, acc_ref, *, relu):
    @pl.when(pl.program_id(2) == 0)
    def _():
        acc_ref[...] = jnp.zeros_like(acc_ref)

    acc_ref[...] += jnp.dot(x_ref[...], w_ref[...],
                            preferred_element_type=jnp.float32)

    @pl.when(pl.program_id(2) == pl.num_programs(2) - 1)
    def _():
        y = acc_ref[...]
        if relu:
            y = jnp.maximum(y, 0.0)
        o_ref[...] = y.astype(o_ref.dtype)


def linear_op(x, w, b=None, relu=False, *, tm=512, tn=512, tk=1024):
    """x:(M,K) @ w:(K,N) (+ b) -> (M,N) f32 via tiled/pipelined MXU kernel."""
    M, K = x.shape
    Nf = w.shape[1]
    Mp, tm_ = _fit(M, tm, 16)     # bf16 sublane packing
    Kp, tk_ = _fit(K, tk, 128)    # lane-dense
    Np, tn_ = _fit(Nf, tn, 128)   # lane-dense output stores

    xp = _bf16(_pad2(x, Mp, Kp))
    wp = _bf16(_pad2(w, Kp, Np))

    grid = (Mp // tm_, Np // tn_, Kp // tk_)
    in_specs = [pl.BlockSpec((tm_, tk_), lambda i, j, k: (i, k)),
                pl.BlockSpec((tk_, tn_), lambda i, j, k: (k, j))]
    args = [xp, wp]
    if b is not None:
        bp = _pad2(b.reshape(1, -1).astype(jnp.float32), 1, Np)
        in_specs.append(pl.BlockSpec((1, tn_), lambda i, j, k: (0, j)))
        args.append(bp)
        kern = functools.partial(_mm_bias_kernel, relu=relu)
    else:
        kern = functools.partial(_mm_kernel, relu=relu)

    out = pl.pallas_call(
        kern,
        out_shape=jax.ShapeDtypeStruct((Mp, Np), jnp.float32),
        grid=grid,
        in_specs=in_specs,
        out_specs=pl.BlockSpec((tm_, tn_), lambda i, j, k: (i, j)),
        scratch_shapes=[pltpu.VMEM((tm_, tn_), jnp.float32)],
        compiler_params=pltpu.CompilerParams(
            dimension_semantics=("parallel", "parallel", "arbitrary"),
            vmem_limit_bytes=VMEM_LIMIT),
    )(*args)
    return out[:M, :Nf]


# ----------------------------------------------------------------------------
# Adjacency aggregation GEMM with fused per-row scaling in the finalize.
#   out[:, :split]  = (A @ rhs)[:, :split]  * dis      (GCN D^-1/2 target scale)
#   out[:, split:]  = (A @ rhs)[:, split:]  * invdeg   (neighbor mean / mean-sq)
# Single full-width output tile -> A is streamed from HBM exactly once.
# ----------------------------------------------------------------------------
def _agg_kernel(a_ref, r_ref, dis_ref, inv_ref, o_ref, acc_ref, *, split):
    @pl.when(pl.program_id(1) == 0)
    def _():
        acc_ref[...] = jnp.zeros_like(acc_ref)

    acc_ref[...] += jnp.dot(a_ref[...], r_ref[...],
                            preferred_element_type=jnp.float32)

    @pl.when(pl.program_id(1) == pl.num_programs(1) - 1)
    def _():
        col = lax.broadcasted_iota(jnp.int32, acc_ref.shape, 1)
        scale = jnp.where(col < split, dis_ref[...], inv_ref[...])
        o_ref[...] = (acc_ref[...] * scale).astype(o_ref.dtype)


def agg_matmul(A_pad, rhs, dis, invdeg, split, n_rows, n_cols, *, tm=512, tk=1024):
    Na = A_pad.shape[0]                           # padded node count (square A)
    Np = _round_up(n_cols, 128)
    _, tm_ = _fit(Na, tm, 16)
    _, tk_ = _fit(Na, tk, 128)
    tm_ = _split_m_for_cores(Na, tm_)             # v7x: both TensorCores busy

    rhs_p = _bf16(_pad2(rhs, Na, Np))
    dis_p = _pad2(dis.reshape(-1, 1).astype(jnp.float32), Na, 1)
    inv_p = _pad2(invdeg.reshape(-1, 1).astype(jnp.float32), Na, 1)

    out = pl.pallas_call(
        functools.partial(_agg_kernel, split=split),
        out_shape=jax.ShapeDtypeStruct((Na, Np), jnp.float32),
        grid=(Na // tm_, Na // tk_),
        in_specs=[pl.BlockSpec((tm_, tk_), lambda i, k: (i, k)),
                  pl.BlockSpec((tk_, Np), lambda i, k: (k, 0)),
                  pl.BlockSpec((tm_, 1), lambda i, k: (i, 0)),
                  pl.BlockSpec((tm_, 1), lambda i, k: (i, 0))],
        out_specs=pl.BlockSpec((tm_, Np), lambda i, k: (i, 0)),
        scratch_shapes=[pltpu.VMEM((tm_, Np), jnp.float32)],
        compiler_params=pltpu.CompilerParams(
            dimension_semantics=("parallel", "arbitrary"),
            vmem_limit_bytes=VMEM_LIMIT),
    )(A_pad, rhs_p, dis_p, inv_p)
    return out[:n_rows, :n_cols]


# ----------------------------------------------------------------------------
# Fused multi-layer MLP kernel: weights resident in VMEM, tile M only
# ----------------------------------------------------------------------------
def _fused_mlp_kernel(x_ref, *refs, relus):
    o_ref = refs[-1]
    wb = refs[:-1]
    h = x_ref[...]
    for l, r in enumerate(relus):
        w = wb[2 * l][...]
        bias = wb[2 * l + 1][...]
        h = jnp.dot(h.astype(jnp.bfloat16), w,
                    preferred_element_type=jnp.float32) + bias
        if r:
            h = jnp.maximum(h, 0.0)
    o_ref[...] = h.astype(o_ref.dtype)


def fused_mlp(x, layers, *, tm=1024):
    """layers: list of (w (K,N), b (N,), relu).  Single pallas_call; padded
    channels carry exact zeros through every layer so results are unaffected."""
    M = x.shape[0]
    dims = [x.shape[1]] + [w.shape[1] for (w, _, _) in layers]
    dims_p = [_round_up(d, 128) for d in dims]
    Mp, tm_ = _fit(M, tm, 16)

    xp = _bf16(_pad2(x, Mp, dims_p[0]))
    args = [xp]
    in_specs = [pl.BlockSpec((tm_, dims_p[0]), lambda i: (i, 0))]
    relus = []
    for li, (w, b, r) in enumerate(layers):
        din, dout = dims_p[li], dims_p[li + 1]
        wp = _bf16(_pad2(w, din, dout))
        bp = _pad2(b.reshape(1, -1).astype(jnp.float32), 1, dout)
        args += [wp, bp]
        in_specs += [pl.BlockSpec((din, dout), lambda i: (0, 0)),
                     pl.BlockSpec((1, dout), lambda i: (0, 0))]
        relus.append(r)

    out = pl.pallas_call(
        functools.partial(_fused_mlp_kernel, relus=tuple(relus)),
        out_shape=jax.ShapeDtypeStruct((Mp, dims_p[-1]), jnp.float32),
        grid=(Mp // tm_,),
        in_specs=in_specs,
        out_specs=pl.BlockSpec((tm_, dims_p[-1]), lambda i: (i, 0)),
        compiler_params=pltpu.CompilerParams(
            dimension_semantics=("parallel",),
            vmem_limit_bytes=VMEM_LIMIT),
    )(*args)
    return out[:M, :dims[-1]]


# ----------------------------------------------------------------------------
# Fused neighbor-distribution generator:
#   per (M tile, sample s): gen_mean = h@Wm+bm, gen_sig = exp(h@Ws+bs),
#   var = gen_mean + gen_sig * z_s, nhij = 4-layer generator MLP(var);
#   accumulate sum / sum-of-squares over s in VMEM, emit mean + unbiased std.
# The (S, N, hid) var / nhij tensors are never materialized in HBM.
# ----------------------------------------------------------------------------
def _neigh_gen_kernel(h_ref, z_ref, mw, mb, sw, sb,
                      w1, b1, w2, b2, w3, b3, w4, b4,
                      mean_out, std_out, sum_ref, sumsq_ref, *, nsamples):
    s_id = pl.program_id(1)

    @pl.when(s_id == 0)
    def _():
        sum_ref[...] = jnp.zeros_like(sum_ref)
        sumsq_ref[...] = jnp.zeros_like(sumsq_ref)

    hb = h_ref[...].astype(jnp.bfloat16)
    gen_mean = jnp.dot(hb, mw[...], preferred_element_type=jnp.float32) + mb[...]
    gen_sig = jnp.exp(jnp.dot(hb, sw[...],
                              preferred_element_type=jnp.float32) + sb[...])
    var = gen_mean + gen_sig * z_ref[0]

    a = var.astype(jnp.bfloat16)
    a = jnp.maximum(jnp.dot(a, w1[...], preferred_element_type=jnp.float32)
                    + b1[...], 0.0).astype(jnp.bfloat16)
    a = jnp.maximum(jnp.dot(a, w2[...], preferred_element_type=jnp.float32)
                    + b2[...], 0.0).astype(jnp.bfloat16)
    a = jnp.maximum(jnp.dot(a, w3[...], preferred_element_type=jnp.float32)
                    + b3[...], 0.0).astype(jnp.bfloat16)
    nh = jnp.dot(a, w4[...], preferred_element_type=jnp.float32) + b4[...]

    sum_ref[...] += nh
    sumsq_ref[...] += nh * nh

    @pl.when(s_id == pl.num_programs(1) - 1)
    def _():
        m = sum_ref[...] * (1.0 / nsamples)
        # torch.std default is unbiased (ddof=1); guarded against nsamples==1.
        v = (sumsq_ref[...] - nsamples * m * m) * (1.0 / max(nsamples - 1, 1))
        mean_out[...] = m
        std_out[...] = jnp.sqrt(jnp.maximum(v, 0.0))


def neigh_recon(params, h, mean_neigh, std_neigh, key, sample_size, hid, *, tm=1024):
    N = h.shape[0]
    hidp = _round_up(hid, 128)
    Mp, tm_ = _fit(N, tm, 16)
    g = params["gen"]

    hp = _bf16(_pad2(h, Mp, hidp))
    # generated directly at the padded shape (padded lanes never reach real
    # output columns: the zero-padded weight rows annihilate them)
    std_z = jax.random.normal(key, (sample_size, Mp, hidp), jnp.bfloat16)

    def wpad(w):
        return _bf16(_pad2(w, hidp, hidp))

    def bpad(b):
        return _pad2(b.reshape(1, -1).astype(jnp.float32), 1, hidp)

    args = [hp, std_z,
            wpad(params["mean_w"]), bpad(params["mean_b"]),
            wpad(params["sigma_w"]), bpad(params["sigma_b"]),
            wpad(g["w1"]), bpad(g["b1"]), wpad(g["w2"]), bpad(g["b2"]),
            wpad(g["w3"]), bpad(g["b3"]), wpad(g["w4"]), bpad(g["b4"])]

    wspec = pl.BlockSpec((hidp, hidp), lambda i, s: (0, 0))
    bspec = pl.BlockSpec((1, hidp), lambda i, s: (0, 0))
    in_specs = [pl.BlockSpec((tm_, hidp), lambda i, s: (i, 0)),
                pl.BlockSpec((1, tm_, hidp), lambda i, s: (s, i, 0)),
                wspec, bspec, wspec, bspec,
                wspec, bspec, wspec, bspec, wspec, bspec, wspec, bspec]

    gen_mean_p, gen_std_p = pl.pallas_call(
        functools.partial(_neigh_gen_kernel, nsamples=sample_size),
        out_shape=(jax.ShapeDtypeStruct((Mp, hidp), jnp.float32),
                   jax.ShapeDtypeStruct((Mp, hidp), jnp.float32)),
        grid=(Mp // tm_, sample_size),
        in_specs=in_specs,
        out_specs=(pl.BlockSpec((tm_, hidp), lambda i, s: (i, 0)),
                   pl.BlockSpec((tm_, hidp), lambda i, s: (i, 0))),
        scratch_shapes=[pltpu.VMEM((tm_, hidp), jnp.float32),
                        pltpu.VMEM((tm_, hidp), jnp.float32)],
        compiler_params=pltpu.CompilerParams(
            dimension_semantics=("parallel", "arbitrary"),
            vmem_limit_bytes=VMEM_LIMIT),
    )(*args)

    generated_mean = gen_mean_p[:N, :hid]
    generated_std = gen_std_p[:N, :hid]

    # Rank-1 closed forms (matrix determinant lemma / Sherman-Morrison):
    #   target_cov    = I + s s^T,   generated_cov = I + (u u^T)/S
    s_vec = std_neigh
    u = generated_std
    c = 1.0 / sample_size
    s_sq = jnp.sum(s_vec * s_vec, axis=1)
    u_sq = jnp.sum(u * u, axis=1)
    beta = 1.0 + c * u_sq
    det_target_cov = 1.0 + s_sq
    det_generated_cov = beta
    coef = c / beta
    u_dot_s = jnp.sum(u * s_vec, axis=1)
    # TODO(synk): the reference returns the full (N, hid, hid) trace_mat but
    # the loss only consumes trace_mat.diagonal(...).sum(-1); we return that
    # trace in closed form instead of materializing O(N*hid^2) tensors.
    trace_val = hid + s_sq - coef * (u_sq + u_dot_s ** 2)
    diff = generated_mean - mean_neigh
    z = jnp.sum(diff * diff, axis=1) - coef * jnp.sum(u * diff, axis=1) ** 2
    return [det_target_cov, det_generated_cov, hid, trace_val, z]


# ----------------------------------------------------------------------------
# Parameter init (shapes follow GADNRBase.__init__)
# ----------------------------------------------------------------------------
def init_params(key, in_dim, hid):
    keys = iter(jax.random.split(key, 64))

    def lin(fan_in, fan_out):
        k1, k2 = jax.random.split(next(keys))
        bound = fan_in ** -0.5
        w = jax.random.uniform(k1, (fan_in, fan_out), jnp.float32, -bound, bound)
        b = jax.random.uniform(k2, (fan_out,), jnp.float32, -bound, bound)
        return w, b

    half = hid // 2

    # TODO(synk): FNN_GAD_NR / MLP_generator are not defined in the provided
    # source; implemented as plain ReLU MLPs with the stated
    # (in, hidden, out, num_layers) dims (no BatchNorm).
    def fnn(in_f, hid_f, out_f, num_layers):
        hidden = [lin(in_f if l == 0 else hid_f, hid_f) for l in range(num_layers)]
        return {"hidden": hidden, "out": lin(hid_f, out_f)}

    p = {}
    p["lin_w"], p["lin_b"] = lin(in_dim, hid)          # self.linear
    p["gcn_w"], p["gcn_b"] = lin(hid, hid)             # shared_encoder (1-layer GCN)
    p["sage_wl"], p["sage_bl"] = lin(hid, hid)         # SAGEConv neighbor lin
    p["sage_wr"], _ = lin(hid, hid)                    # SAGEConv root lin (no bias)
    # TODO(synk): PNAConv(['std'], ['identity']) simplified to neighbor-std
    # aggregation followed by one linear projection.
    p["std_w"], p["std_b"] = lin(hid, hid)
    p["mean_w"], p["mean_b"] = lin(hid, hid)           # mlp_mean
    p["sigma_w"], p["sigma_b"] = lin(hid, hid)         # mlp_sigma
    gen = {}
    for i in range(1, 5):                              # MLP_generator: 4 linears
        gen[f"w{i}"], gen[f"b{i}"] = lin(hid, hid)
    p["gen"] = gen
    p["deg_dec"] = fnn(half, half, 1, 4)               # degree_decoder
    p["fdec_s"] = fnn(half, half, half, 3)             # feature_decoder_s
    p["fdec_ns"] = fnn(half, half, half, 3)            # feature_decoder_ns
    return p


def fnn_apply(p, x, final_relu=False):
    layers = [(w, b, True) for (w, b) in p["hidden"]]
    layers.append((p["out"][0], p["out"][1], final_relu))
    return fused_mlp(x, layers)


# ----------------------------------------------------------------------------
# GADNRBase.forward (full_batch=True path)
# ----------------------------------------------------------------------------
def gadnr_forward(params, x, edge_index, key, sample_size=2, sample_time=1):
    N = x.shape[0]
    hid = params["lin_w"].shape[1]
    half = hid // 2

    # --- adjacency: 0/1 with self loops (as process_graph produces), built
    #     ONCE, directly in bf16 at its padded shape; degrees via scatter-add
    #     on edge_index (assumes no duplicate edges, as to_undirected +
    #     add_self_loops produce).
    Na = _round_up(N, 128)
    src, dst = edge_index[0], edge_index[1]
    A = jnp.zeros((Na, Na), jnp.bfloat16).at[dst, src].set(1.0)
    deg = jnp.zeros((N,), jnp.float32).at[dst].add(1.0)
    dis = jnp.where(deg > 0, lax.rsqrt(jnp.maximum(deg, 1.0)), 0.0)  # GCN conv.
    invdeg = 1.0 / jnp.maximum(deg, 1.0)

    # TODO(synk): flip_sensitive_attributes is not defined in the source file;
    # assumed semantics: binary flip of sensitive attribute column 0.
    x_cf = x.at[:, 0].set(1.0 - x[:, 0])

    # --- encoder: original + counterfactual batched along M ---
    h0_both = linear_op(jnp.concatenate([x, x_cf], axis=0),
                        params["lin_w"], params["lin_b"])
    h0, h0_cf = h0_both[:N], h0_both[N:]

    # shift by the global column mean before forming the sum / sum-of-squares
    # groups: variance is shift-invariant, and this removes the bf16
    # E[x^2]-E[x]^2 cancellation.
    mu = jnp.mean(h0, axis=0, keepdims=True)
    y = h0 - mu
    disc = dis[:, None]

    # --- single pass over A: GCN propagate (orig + cf), neighbor mean and
    #     mean-of-squares, with the per-row normalizations fused in-kernel ---
    rhs = jnp.concatenate([h0 * disc, h0_cf * disc, y, y * y], axis=1)
    agg = agg_matmul(A, rhs, dis, invdeg, split=2 * hid, n_rows=N, n_cols=4 * hid)
    agg_gcn = agg[:, :hid]                 # already * d^-1/2 (target side)
    agg_gcn_cf = agg[:, hid:2 * hid]
    ey = agg[:, 2 * hid:3 * hid]           # already / deg
    eyy = agg[:, 3 * hid:4 * hid]

    nb_mean = ey + mu
    std_feats = jnp.sqrt(jnp.maximum(eyy - ey * ey, 0.0) + 1e-5)

    h_both = linear_op(jnp.concatenate([agg_gcn, agg_gcn_cf], axis=0),
                       params["gcn_w"], params["gcn_b"])
    h, h_cf = h_both[:N], h_both[N:]
    h_s, h_ns = h[:, :half], h[:, half:]
    h_s_cf = h_cf[:, :half]
    center_h0 = h0

    # degree decoder; the outer F.relu is fused into the last layer
    degree_logits = fnn_apply(params["deg_dec"], h_ns, final_relu=True)

    # --- target neighbor distribution (key-independent -> hoisted) ---
    # SAGEConv(mean): lin_l(mean_j h0_j) + lin_r(h0) fused into one GEMM
    sage_w = jnp.concatenate([params["sage_wl"], params["sage_wr"]], axis=0)
    mean_neigh = linear_op(jnp.concatenate([nb_mean, h0], axis=1),
                           sage_w, params["sage_bl"])
    std_neigh = linear_op(std_feats, params["std_w"], params["std_b"])

    # loop-invariant feature decoders hoisted; the two feature_decoder_s
    # applications (orig + counterfactual) share weights -> one row-batched call
    s_both = fnn_apply(params["fdec_s"], jnp.concatenate([h_s, h_s_cf], axis=0))
    h0_prime_s, h0_prime_s_cf = s_both[:N], s_both[N:]
    h0_prime_ns = fnn_apply(params["fdec_ns"], h_ns)

    feat_s, feat_ns, feat_s_cf, neigh_recon_list = [], [], [], []
    for _ in range(sample_time):
        key, sub = jax.random.split(key)
        feat_s.append(h0_prime_s)
        feat_ns.append(h0_prime_ns)
        feat_s_cf.append(h0_prime_s_cf)
        neigh_recon_list.append(
            neigh_recon(params, h, mean_neigh, std_neigh, sub, sample_size, hid))

    return (center_h0, degree_logits, feat_s, feat_ns, feat_s_cf,
            neigh_recon_list)


# ----------------------------------------------------------------------------
# Demo
# ----------------------------------------------------------------------------
if __name__ == "__main__":
    key = jax.random.PRNGKey(0)
    N, in_dim, hid = 16, 8, 32
    sample_size, sample_time = 2, 1

    k_x, k_p, k_fwd = jax.random.split(key, 3)
    x = jax.random.uniform(k_x, (N, in_dim), jnp.float32)
    x = x.at[:, 0].set((x[:, 0] > 0.5).astype(jnp.float32))  # binary sensitive attr

    # undirected ring graph + self loops (as process_graph would produce)
    src = jnp.arange(N, dtype=jnp.int32)
    dst = (src + 1) % N
    edge_index = jnp.concatenate(
        [jnp.stack([src, dst]), jnp.stack([dst, src]), jnp.stack([src, src])],
        axis=1)

    params = init_params(k_p, in_dim, hid)
    out = gadnr_forward(params, x, edge_index, k_fwd, sample_size, sample_time)

    for leaf in jax.tree_util.tree_leaves(out):
        if isinstance(leaf, jax.Array):
            leaf.block_until_ready()
    print("KERNEL_OK")
</pallas_src>

<mosaic_0001>
module attributes {stable_mosaic.version = 11 : i64} {
  func.func @_mm_bias_kernel(%arg0: i32, %arg1: i32, %arg2: i32, %arg3: memref<32x128xbf16, #tpu.memory_space<vmem>>, %arg4: memref<128x128xbf16, #tpu.memory_space<vmem>>, %arg5: memref<1x128xf32, #tpu.memory_space<vmem>>, %arg6: memref<32x128xf32, #tpu.memory_space<vmem>>, %arg7: memref<32x128xf32, #tpu.memory_space<vmem>>) attributes {dimension_semantics = [#tpu.dimension_semantics<parallel>, #tpu.dimension_semantics<parallel>, #tpu.dimension_semantics<arbitrary>], iteration_bounds = array<i64: 1, 1, 1>, scalar_prefetch = 0 : i64, scratch_operands = 1 : i64, tpu.core_type = #tpu.core_type<tc>, window_params = [{transform_indices = @transform_0, window_bounds = array<i64: 32, 128>}, {transform_indices = @transform_1, window_bounds = array<i64: 128, 128>}, {transform_indices = @transform_2, window_bounds = array<i64: 1, 128>}, {transform_indices = @transform_3, window_bounds = array<i64: 32, 128>}]} {
    %c0_i32 = arith.constant 0 : i32
    %0 = arith.cmpi eq, %arg2, %c0_i32 : i32
    %1 = arith.extui %0 : i1 to i32
    %c0_i32_0 = arith.constant 0 : i32
    %2 = arith.cmpi ne, %1, %c0_i32_0 : i32
    scf.if %2 {
      %cst_10 = arith.constant 0.000000e+00 : f32
      %12 = vector.broadcast %cst_10 : f32 to vector<32x128xf32>
      %c0_11 = arith.constant 0 : index
      %c0_12 = arith.constant 0 : index
      %13 = vector.load %arg7[%c0_11, %c0_12] : memref<32x128xf32, #tpu.memory_space<vmem>>, vector<32x128xf32>
      tpu.vector_store %arg7[%c0_11, %c0_12], %12 {strides = array<i32>} : memref<32x128xf32, #tpu.memory_space<vmem>>, vector<32x128xf32>,
    } else {
    }
    %c0 = arith.constant 0 : index
    %c0_1 = arith.constant 0 : index
    %3 = vector.load %arg7[%c0, %c0_1] : memref<32x128xf32, #tpu.memory_space<vmem>>, vector<32x128xf32>
    %c0_2 = arith.constant 0 : index
    %c0_3 = arith.constant 0 : index
    %4 = vector.load %arg3[%c0_2, %c0_3] : memref<32x128xbf16, #tpu.memory_space<vmem>>, vector<32x128xbf16>
    %c0_4 = arith.constant 0 : index
    %c0_5 = arith.constant 0 : index
    %5 = vector.load %arg4[%c0_4, %c0_5] : memref<128x128xbf16, #tpu.memory_space<vmem>>, vector<128x128xbf16>
    %cst = arith.constant dense<0.000000e+00> : vector<32x128xf32>
    %6 = tpu.matmul %4, %5, %cst {dimension_numbers = #tpu.dot_dimension_numbers<[1], [0], [0], [1], [0, 0, 1, 1], [], []>} : vector<32x128xbf16>, vector<128x128xbf16>, vector<32x128xf32> -> vector<32x128xf32>
    %7 = arith.addf %3, %6 : vector<32x128xf32>
    %c0_6 = arith.constant 0 : index
    %c0_7 = arith.constant 0 : index
    %8 = vector.load %arg7[%c0_6, %c0_7] : memref<32x128xf32, #tpu.memory_space<vmem>>, vector<32x128xf32>
    tpu.vector_store %arg7[%c0_6, %c0_7], %7 {strides = array<i32>} : memref<32x128xf32, #tpu.memory_space<vmem>>, vector<32x128xf32>,
    %c0_i32_8 = arith.constant 0 : i32
    %9 = arith.cmpi eq, %arg2, %c0_i32_8 : i32
    %10 = arith.extui %9 : i1 to i32
    %c0_i32_9 = arith.constant 0 : i32
    %11 = arith.cmpi ne, %10, %c0_i32_9 : i32
    scf.if %11 {
      %c0_10 = arith.constant 0 : index
      %c0_11 = arith.constant 0 : index
      %12 = vector.load %arg7[%c0_10, %c0_11] : memref<32x128xf32, #tpu.memory_space<vmem>>, vector<32x128xf32>
      %c0_12 = arith.constant 0 : index
      %c0_13 = arith.constant 0 : index
      %13 = vector.load %arg5[%c0_12, %c0_13] : memref<1x128xf32, #tpu.memory_space<vmem>>, vector<1x128xf32>
      %14 = vector.broadcast %13 : vector<1x128xf32> to vector<32x128xf32>
      %15 = arith.addf %12, %14 : vector<32x128xf32>
      %c0_14 = arith.constant 0 : index
      %c0_15 = arith.constant 0 : index
      %16 = vector.load %arg6[%c0_14, %c0_15] : memref<32x128xf32, #tpu.memory_space<vmem>>, vector<32x128xf32>
      tpu.vector_store %arg6[%c0_14, %c0_15], %15 {strides = array<i32>} : memref<32x128xf32, #tpu.memory_space<vmem>>, vector<32x128xf32>,
    } else {
    }
    return
  }
  func.func @transform_0(%arg0: i32, %arg1: i32, %arg2: i32) -> (i32, i32) {
    %c0_i32 = arith.constant 0 : i32
    return %arg0, %arg2 : i32, i32
  }
  func.func @transform_1(%arg0: i32, %arg1: i32, %arg2: i32) -> (i32, i32) {
    %c0_i32 = arith.constant 0 : i32
    return %arg2, %arg1 : i32, i32
  }
  func.func @transform_2(%arg0: i32, %arg1: i32, %arg2: i32) -> (i32, i32) {
    %c0_i32 = arith.constant 0 : i32
    %c0_i32_0 = arith.constant 0 : i32
    return %c0_i32, %arg1 : i32, i32
  }
  func.func @transform_3(%arg0: i32, %arg1: i32, %arg2: i32) -> (i32, i32) {
    %c0_i32 = arith.constant 0 : i32
    return %arg0, %arg1 : i32, i32
  }
}

</mosaic_0001>

<bundles_post_ra>
// kernel: tpu_custom_call.1
= control target key start
LH: loop header
LB: loop body
LE: loop exit
PB: predicated region body
PF: predicated region fallthrough
CT: control target
= control target key end

     0   :  { %8 = vsyncpa [#allocation4], 0  ;;  %s480_s0 = inlined_call_operand.hbm [shape: bf16[32,128], index: 0, kind: input, shape index: {}]   ;;  %s481_s1 = inlined_call_operand.hbm [shape: bf16[128,128], index: 1, kind: input, shape index: {}]   ;;  %s482_s2 = inlined_call_operand.hbm [shape: f32[1,128], index: 2, kind: input, shape index: {}]   ;;  %s483_s3 = inlined_call_operand.hbm [shape: f32[32,128], index: 3, kind: output, shape index: {}]  }
   0x1   :  { %9 = vsyncpa [#allocation7], 0 }
   0x2   :  { %10 = vsyncpa [#allocation5], 0  ;;  %s397_s12 = smov [#allocation6]   ;;  %s398_s14 = smov [#allocation3]  }
   0x3   :  { %s28_s13 = sshll.u32 %s397_s12, 4  ;;  %s16_s15 = sshll.u32 %s398_s14, 4  ;;  %s29_s13 = int_to_ptr.vmem [resolvable:$true] %s28_s13  ;;  %s425_s15 = int_to_ptr.vmem [resolvable:$true] %s16_s15 }
   0x4   :  { %s303_s18 = scalar_lea.hbm %s481_s1, 1024 }
   0x5   :  { %p304_p0 = scmp.ne.s32.totalorder %s481_s1, %s303_s18  ;;  %p307_p1 = scmp.lt.u32.totalorder %s303_s18, %s481_s1 }
   0x7   :  { %p309_p2 = pnand %p307_p1, %p304_p0 }
   0x9   :  { %312 = shalt.err (!%p309_p2)
}
   0xa   :  { %s313_s23 = scalar_lea.vmem %s29_s13, 1024  ;;  %p318_p4 = scmp.lt.s32.totalorder %s29_s13, %s29_s13 }
   0xb   :  { %p314_p3 = scmp.ne.s32.totalorder %s29_s13, %s313_s23  ;;  %p319_p5 = scmp.lt.s32.totalorder %s313_s23, %s313_s23 }
   0xd   :  { %p320_p6 = por %p319_p5, %p318_p4 }
   0xf   :  { %p321_p7 = pnand %p320_p6, %p314_p3 }
  0x11   :  { %324 = shalt.err (!%p321_p7)
}
  0x12   :  { %s399_s24 = smov 64   ;;  %s400_s25 = smov 4  }
  0x13   :  { %34 = dma.hbm_to_vmem [thread:$0]  %s481_s1, 1024, %s29_s13, [#allocation7], %s399_s24, %s399_s24, %s400_s25  }
  0x14   :  { %s325_s30 = scalar_lea.hbm %s480_s0, 256 }
  0x15   :  { %p326_p8 = scmp.ne.s32.totalorder %s480_s0, %s325_s30  ;;  %p329_p9 = scmp.lt.u32.totalorder %s325_s30, %s480_s0 }
  0x17   :  { %p331_p10 = pnand %p329_p9, %p326_p8 }
  0x19   :  { %334 = shalt.err (!%p331_p10)
}
  0x1a   :  { %s335_s8 = scalar_lea.vmem %s425_s15, 256  ;;  %p340_p12 = scmp.lt.s32.totalorder %s425_s15, %s425_s15 }
  0x1b   :  { %p336_p11 = scmp.ne.s32.totalorder %s425_s15, %s335_s8  ;;  %p341_p13 = scmp.lt.s32.totalorder %s335_s8, %s335_s8 }
  0x1d   :  { %p342_p0 = por %p341_p13, %p340_p12 }
  0x1f   :  { %p343_p1 = pnand %p342_p0, %p336_p11 }
  0x21   :  { %346 = shalt.err (!%p343_p1)
}
  0x22   :  { %22 = dma.hbm_to_vmem [thread:$0]  %s480_s0, 256, %s425_s15, [#allocation4], %s399_s24, %s399_s24, %s400_s25  }
  0x23   :  { %s401_s10 = smov [#allocation8]   ;;  %s347_s14 = scalar_lea.hbm %s482_s2, 16 }
  0x24   :  { %s41_s11 = sshll.u32 %s401_s10, 4  ;;  %p348_p2 = scmp.ne.s32.totalorder %s482_s2, %s347_s14  ;;  %s42_s11 = int_to_ptr.vmem [resolvable:$true] %s41_s11 }
  0x25   :  { %p351_p3 = scmp.lt.u32.totalorder %s347_s14, %s482_s2 }
  0x27   :  { %p353_p4 = pnand %p351_p3, %p348_p2 }
  0x29   :  { %356 = shalt.err (!%p353_p4)
}
  0x2a   :  { %s357_s20 = scalar_lea.vmem %s42_s11, 16  ;;  %s361_s0 = scalar_lea.vmem %s42_s11, 32 }
  0x2b   :  { %p358_p5 = scmp.ne.s32.totalorder %s42_s11, %s357_s20  ;;  %p362_p6 = scmp.lt.s32.totalorder %s42_s11, %s42_s11 }
  0x2c   :  { %p363_p7 = scmp.lt.s32.totalorder %s361_s0, %s357_s20 }
  0x2e   :  { %p364_p8 = por %p363_p7, %p362_p6 }
  0x30   :  { %p365_p9 = pnand %p364_p8, %p358_p5 }
  0x32   :  { %368 = shalt.err (!%p365_p9)
}
  0x33   :  { %44 = dma.hbm_to_vmem [thread:$0]  %s482_s2, 16, %s42_s11, [#allocation7]  }
  0x34   :  { %391 = dma.done.wait [#allocation4], 256  }
  0x35   :  { %392 = vsyncadd [#allocation4], 4294967040 }
  0x36   :  { %393 = dma.done.wait [#allocation7], 1040  }
  0x37   :  { %394 = vsyncadd [#allocation7], 4294966256  ;;  %v293_v0 = vld [vmem:[#allocation6] sm:$0xff]   ;;  %v294_v1 = vld [vmem:[#allocation6 + $0x8] sm:$0xff]   ;;  %s402_s2 = smov [#allocation9]  }
  0x38   :  { %265 = vmatprep.subr.bf16.mxu0 %v293_v0  ;;  %v295_v2 = vld [vmem:[#allocation6 + $0x10] sm:$0xff]   ;;  %v296_v3 = vld [vmem:[#allocation6 + $0x18] sm:$0xff]   ;;  %v297_v5 = vld [vmem:[#allocation6 + $0x20] sm:$0xff]   ;;  %s231_s22 = sshll.u32 %s402_s2, 4  ;;  %s232_s22 = int_to_ptr.vmem [resolvable:$true] %s231_s22 }
  0x39   :  { %266 = vmatpush3.bf16.msra.mxu0 %v293_v0  ;;  %v301_v4 = vld [vmem:[#allocation3] sm:$0xff]   ;;  %v298_v6 = vld [vmem:[#allocation6 + $0x28] sm:$0xff]   ;;  %v300_v8 = vld [vmem:[#allocation6 + $0x38] sm:$0xff]   ;;  %s369_s23 = scalar_lea.vmem %s232_s22, 512  ;;  %p374_p11 = scmp.lt.s32.totalorder %s232_s22, %s232_s22 }
  0x3a   :  { %267 = vmatprep.subr.bf16.mxu0 %v294_v1  ;;  %281 = vmatprep.mubr.bf16.mxu0 %v301_v4  ;;  %v299_v7 = vld [vmem:[#allocation6 + $0x30] sm:$0xff]   ;;  %v302_v9 = vld [vmem:[#allocation3 + $0x8] sm:$0xff]   ;;  %v254_v10 = vld [vmem:[#allocation8] ss:$0 sm:$0xff]  ;;  %p370_p10 = scmp.ne.s32.totalorder %s232_s22, %s369_s23  ;;  %p375_p12 = scmp.lt.s32.totalorder %s369_s23, %s369_s23 }
  0x3c   :  { %p376_p13 = por %p375_p12, %p374_p11 }
  0x3d   :  { %268 = vmatpush3.bf16.msra.mxu0 %v294_v1 }
  0x3e   :  { %269 = vmatprep.subr.bf16.mxu0 %v295_v2  ;;  %p377_p0 = pnand %p376_p13, %p370_p10 }
  0x41   :  { %270 = vmatpush3.bf16.msra.mxu0 %v295_v2 }
  0x42   :  { %271 = vmatprep.subr.bf16.mxu0 %v296_v3 }
  0x45   :  { %272 = vmatpush3.bf16.msra.mxu0 %v296_v3 }
  0x46   :  { %273 = vmatprep.subr.bf16.mxu0 %v297_v5 }
  0x49   :  { %274 = vmatpush3.bf16.msra.mxu0 %v297_v5 }
  0x4a   :  { %275 = vmatprep.subr.bf16.mxu0 %v298_v6 }
  0x4d   :  { %276 = vmatpush3.bf16.msra.mxu0 %v298_v6 }
  0x4e   :  { %277 = vmatprep.subr.bf16.mxu0 %v299_v7 }
  0x51   :  { %278 = vmatpush3.bf16.msra.mxu0 %v299_v7 }
  0x52   :  { %279 = vmatprep.subr.bf16.mxu0 %v300_v8 }
  0x55   :  { %280 = vmatpush3.bf16.msra.mxu0 %v300_v8 }
  0x58   :  { %282 = vmatmul.mubr.bf16.vlgmr.msra.gmra.mrb[0].mxu0 %v302_v9 }
 0x12b   :  { %v283_v11 = vpop.f32.mrb[0].mxu0 }
 0x12c   :  { %v220_v12 = vadd.f32 %v283_v11, %v254_v10  ;;  %v181_v13 = vpop.f32.mrb[1].mxu0 }
 0x12d   :  { %v218_v14 = vadd.f32 %v254_v10, %v181_v13  ;;  %v284_v15 = vpop.f32.mrb[2].mxu0 }
 0x12e   :  { %224 = vst [vmem:[#allocation9 + $0x10] sm:$0xff] %v220_v12  ;;  %v221_v16 = vadd.f32 %v284_v15, %v254_v10  ;;  %v184_v17 = vpop.f32.mrb[3].mxu0 }
 0x12f   :  { %222 = vst [vmem:[#allocation9] sm:$0xff] %v218_v14  ;;  %v219_v18 = vadd.f32 %v254_v10, %v184_v17 }
 0x130   :  { %225 = vst [vmem:[#allocation9 + $0x18] sm:$0xff] %v221_v16 }
 0x131   :  { %223 = vst [vmem:[#allocation9 + $0x8] sm:$0xff] %v219_v18 }
 0x132   :  { %380 = shalt.err (!%p377_p0)
}
 0x133   :  { %s381_s26 = scalar_lea.hbm %s483_s3, 512 }
 0x134   :  { %p382_p1 = scmp.ne.s32.totalorder %s483_s3, %s381_s26  ;;  %p385_p2 = scmp.lt.u32.totalorder %s381_s26, %s483_s3 }
 0x136   :  { %p387_p3 = pnand %p385_p2, %p382_p1 }
 0x138   :  { %390 = shalt.err (!%p387_p3)
}
 0x139   :  { %s403_s4 = smov 128   ;;  %s404_s5 = smov 8  }
 0x13a   :  { %237 = dma.vmem_to_hbm [thread:$0]  %s232_s22, 512, %s483_s3, [#allocation5], %s403_s4, %s403_s4, %s404_s5  }
 0x13b   :  { %395 = dma.done.wait [#allocation5], 512  }
 0x13c   :  { %396 = vsyncadd [#allocation5], 4294966784 }
 0x13d   :  { %241 = vsyncpa [#allocation4], 1 }
 0x13e   :  { %242 = vsyncpa [#allocation7], 1 }
 0x13f   :  { %243 = vsyncpa [#allocation5], 1 }

</bundles_post_ra>
